<compile_context>
chip_gen: v7x
topology: tpu7x:2x2x1
jax: 0.10.0
libtpu: 0.0.40
codegen_flags: <defaults>
</compile_context>

<pallas_src>
import functools

import jax
import jax.numpy as jnp
from jax import lax
from jax.experimental import pallas as pl
from jax.experimental.pallas import tpu as pltpu


# -----------------------------------------------------------------------------
# Stage 1: fused QKV projection.  Q is pre-scaled by C**-0.5 so the flash kernel
# never multiplies the (T, T) scores by the scale.
# -----------------------------------------------------------------------------
def _qkv_proj_kernel(x_ref, wq_ref, wk_ref, wv_ref, q_ref, k_ref, v_ref, *, scale):
    x = x_ref[...]                                                        # (t_r, C)
    q = jnp.dot(x, wq_ref[...], preferred_element_type=jnp.float32) * scale
    q_ref[...] = q.astype(q_ref.dtype)
    k_ref[...] = jnp.dot(x, wk_ref[...],
                         preferred_element_type=jnp.float32).astype(k_ref.dtype)
    v_ref[...] = jnp.dot(x, wv_ref[...],
                         preferred_element_type=jnp.float32).astype(v_ref.dtype)


def _qkv_projection(x, wq, wk, wv, scale, t_r):
    B, T, C = x.shape
    nhh = wq.shape[1]
    n_r = T // t_r
    row_spec = pl.BlockSpec((None, t_r, nhh), lambda b, r: (b, r, 0))
    out_sds = jax.ShapeDtypeStruct((B, T, nhh), x.dtype)
    return pl.pallas_call(
        functools.partial(_qkv_proj_kernel, scale=scale),
        out_shape=(out_sds, out_sds, out_sds),
        grid_spec=pltpu.PrefetchScalarGridSpec(
            num_scalar_prefetch=0,
            grid=(B, n_r),
            in_specs=[
                pl.BlockSpec((None, t_r, C), lambda b, r: (b, r, 0)),     # x rows
                # Constant-index weights: fetched once (could also be single-buffered
                # via pipeline_mode=pl.Buffered(1) to save the unused second buffer).
                pl.BlockSpec((C, nhh), lambda b, r: (0, 0)),              # Wq
                pl.BlockSpec((C, nhh), lambda b, r: (0, 0)),              # Wk
                pl.BlockSpec((C, nhh), lambda b, r: (0, 0)),              # Wv
            ],
            out_specs=(row_spec, row_spec, row_spec),
        ),
        compiler_params=pltpu.CompilerParams(
            dimension_semantics=("parallel", "parallel"),
            vmem_limit_bytes=48 * 1024 * 1024,
        ),
    )(x, wq, wk, wv)


# -----------------------------------------------------------------------------
# Stage 2: flash attention (online softmax) + fused output projection.
# -----------------------------------------------------------------------------
def _flash_attn_kernel(q_ref, k_ref, v_ref, wo_ref, bo_ref, out_ref,
                       m_sc, l_sc, acc_sc, *, n_heads, head_size, t_q, t_kv):
    qi = pl.program_id(1)
    ki = pl.program_id(2)
    n_kv = pl.num_programs(2)
    mm_dtype = q_ref.dtype   # feed the MXU the input dtype; accumulate in f32

    # ---- init online-softmax state for a new q tile ----
    @pl.when(ki == 0)
    def _init():
        m_sc[...] = jnp.full_like(m_sc, -jnp.inf)
        l_sc[...] = jnp.zeros_like(l_sc)
        acc_sc[...] = jnp.zeros_like(acc_sc)

    # ---- only diagonal / lower-triangular kv blocks contribute (causal) ----
    @pl.when(ki * t_kv <= qi * t_q + (t_q - 1))
    def _compute():
        # Additive causal bias, built ONCE per block and shared by all heads.
        # Large finite value (not -inf) avoids exp(-inf - -inf) = NaN hazards.
        row = qi * t_q + lax.broadcasted_iota(jnp.int32, (t_q, t_kv), 0)
        col = ki * t_kv + lax.broadcasted_iota(jnp.int32, (t_q, t_kv), 1)
        mask_bias = jnp.where(col <= row, 0.0, -1e30).astype(jnp.float32)

        for h in range(n_heads):                       # static unroll over heads
            sl = slice(h * head_size, (h + 1) * head_size)
            q_h = q_ref[:, sl]                         # (t_q, Hd), pre-scaled
            k_h = k_ref[:, sl]                         # (t_kv, Hd)
            v_h = v_ref[:, sl]                         # (t_kv, Hd)

            # q @ k^T without an explicit transpose: contract last dims directly.
            s = lax.dot_general(q_h, k_h, (((1,), (1,)), ((), ())),
                                preferred_element_type=jnp.float32)  # (t_q, t_kv)
            s = s + mask_bias

            m_prev = m_sc[h]                           # (t_q, 1)
            m_new = jnp.maximum(m_prev, jnp.max(s, axis=-1, keepdims=True))
            alpha = jnp.exp(m_prev - m_new)
            # TODO(synk): could compute exp in bf16 on v6e/v7x for EUP throughput.
            p = jnp.exp(s - m_new)                     # unnormalized probs (f32)
            l_sc[h] = alpha * l_sc[h] + jnp.sum(p, axis=-1, keepdims=True)
            acc_sc[h] = alpha * acc_sc[h] + jnp.dot(
                p.astype(mm_dtype), v_h, preferred_element_type=jnp.float32)
            m_sc[h] = m_new

    # ---- finalize: normalize, pack heads lane-dense, one output-projection matmul ----
    @pl.when(ki == n_kv - 1)
    def _finalize():
        parts = []
        for h in range(n_heads):
            inv_l = pl.reciprocal(l_sc[h], approx=True)          # EUP slot, finalize only
            parts.append((acc_sc[h] * inv_l).astype(wo_ref.dtype))
        ctx = jnp.concatenate(parts, axis=-1)                    # (t_q, nH*Hd), packed
        out = jnp.dot(ctx, wo_ref[...], preferred_element_type=jnp.float32)
        out = out + bo_ref[...].astype(jnp.float32)              # (1, C) broadcasts
        # TODO(synk): attention-prob / post-projection dropout skipped (eval mode).
        out_ref[...] = out.astype(out_ref.dtype)


def _pick_seq_tile(T, C, nhh, num_heads, head_size, itemsize,
                   vmem_budget=40 * 1024 * 1024):
    """Largest power-of-two tile dividing T whose flash-kernel VMEM footprint fits."""
    lane = 128

    def footprint(t):
        # double-buffered q/k/v/out blocks + (double-buffered) wo/bo
        io = 2 * (3 * t * nhh + t * C) * itemsize + 2 * (nhh * C + C) * itemsize
        # f32 scratch with lane padding (m, l pad 1 -> 128 lanes; acc pads Hd)
        scratch = num_heads * t * (lane + lane + max(head_size, lane)) * 4
        # transient (t, t) f32 score/prob temporaries (~2 live per head iteration)
        temps = 2 * t * t * 4
        return io + scratch + temps

    cap = 256 if num_heads >= 8 else 1024   # bound live ranges of the static head unroll
    for t in (1024, 512, 256, 128):
        if t <= cap and T % t == 0 and footprint(t) <= vmem_budget:
            return t
    return T  # small or irregular T: a single full-sequence tile


def multi_head_attention(x, wk, wq, wv, wo, bo, *, num_heads, head_size):
    """x: (B, T, C); wk/wq/wv: (C, nH*Hd); wo: (nH*Hd, C); bo: (C,). Returns (B, T, C)."""
    B, T, C = x.shape
    nhh = num_heads * head_size
    assert wk.shape == (C, nhh) and wq.shape == (C, nhh) and wv.shape == (C, nhh)
    assert wo.shape == (nhh, C) and bo.shape == (C,)

    scale = float(C) ** -0.5   # module uses C**-0.5 (n_embd), not head_size**-0.5
    itemsize = jnp.dtype(x.dtype).itemsize
    t = _pick_seq_tile(T, C, nhh, num_heads, head_size, itemsize)   # t_q == t_kv (required
    n_q = T // t                                                    #  for the kv DMA clamp)
    n_kv = T // t

    # Stage 1: project Q (pre-scaled), K, V exactly once per token.
    q, k, v = _qkv_projection(x, wq, wk, wv, scale, t)

    bo2 = bo.reshape(1, C)
    kernel = functools.partial(_flash_attn_kernel, n_heads=num_heads,
                               head_size=head_size, t_q=t, t_kv=t)

    # kv-tile DMA clamp: grid steps above the causal diagonal are never computed, so
    # re-request the previous block index -> Pallas skips the DMA for those steps.
    kv_index = lambda b, qi, ki: (b, jnp.minimum(ki, qi), 0)

    return pl.pallas_call(
        kernel,
        out_shape=jax.ShapeDtypeStruct((B, T, C), x.dtype),
        grid_spec=pltpu.PrefetchScalarGridSpec(
            num_scalar_prefetch=0,
            grid=(B, n_q, n_kv),
            in_specs=[
                pl.BlockSpec((None, t, nhh), lambda b, qi, ki: (b, qi, 0)),   # Q (scaled)
                pl.BlockSpec((None, t, nhh), kv_index),                       # K
                pl.BlockSpec((None, t, nhh), kv_index),                       # V
                # Constant-index projection weights (fetched once; Buffered(1) would
                # also drop the unused second VMEM buffer).
                pl.BlockSpec((nhh, C), lambda b, qi, ki: (0, 0)),             # Wo
                pl.BlockSpec((1, C), lambda b, qi, ki: (0, 0)),               # proj bias
            ],
            out_specs=pl.BlockSpec((None, t, C), lambda b, qi, ki: (b, qi, 0)),
            scratch_shapes=[
                pltpu.VMEM((num_heads, t, 1), jnp.float32),           # running max m
                pltpu.VMEM((num_heads, t, 1), jnp.float32),           # running sum l
                pltpu.VMEM((num_heads, t, head_size), jnp.float32),   # running acc
            ],
        ),
        compiler_params=pltpu.CompilerParams(
            dimension_semantics=("parallel", "parallel", "arbitrary"),
            vmem_limit_bytes=48 * 1024 * 1024,   # safe on v7x (64 MiB physical VMEM)
        ),
    )(q, k, v, wo, bo2)


def multi_head_attention_ref(x, wk, wq, wv, wo, bo, *, num_heads, head_size):
    """Pure-JAX reference mirroring the PyTorch MultiHeadAttention forward (eval mode)."""
    B, T, C = x.shape
    k = (x @ wk).reshape(B, T, num_heads, head_size)
    q = (x @ wq).reshape(B, T, num_heads, head_size)
    v = (x @ wv).reshape(B, T, num_heads, head_size)
    wei = jnp.einsum("bqhd,bkhd->bhqk", q, k) * (float(C) ** -0.5)
    mask = jnp.tril(jnp.ones((T, T), dtype=bool))
    wei = jnp.where(mask[None, None], wei, -jnp.inf)
    wei = jax.nn.softmax(wei, axis=-1)
    ctx = jnp.einsum("bhqk,bkhd->bqhd", wei, v).reshape(B, T, num_heads * head_size)
    return ctx @ wo + bo


if __name__ == "__main__":
    # Small shapes consistent with the module: n_embd == num_heads * head_size.
    B, T, C = 2, 8, 32
    num_heads, head_size = 2, 16
    dropout = 0.0  # eval-mode / identity dropout

    key = jax.random.PRNGKey(0)
    kx, kk, kq, kv, ko, kb = jax.random.split(key, 6)

    x = jax.random.normal(kx, (B, T, C), dtype=jnp.float32)

    # nn.Linear-style init U(-1/sqrt(in), 1/sqrt(in)); weights stored as (in, out).
    bound = 1.0 / (C ** 0.5)
    wk = jax.random.uniform(kk, (C, num_heads * head_size), jnp.float32, -bound, bound)
    wq = jax.random.uniform(kq, (C, num_heads * head_size), jnp.float32, -bound, bound)
    wv = jax.random.uniform(kv, (C, num_heads * head_size), jnp.float32, -bound, bound)
    bound_o = 1.0 / ((num_heads * head_size) ** 0.5)
    wo = jax.random.uniform(ko, (num_heads * head_size, C), jnp.float32, -bound_o, bound_o)
    bo = jax.random.uniform(kb, (C,), jnp.float32, -bound_o, bound_o)

    out = multi_head_attention(x, wk, wq, wv, wo, bo,
                               num_heads=num_heads, head_size=head_size)
    out = jax.block_until_ready(out)

    ref = multi_head_attention_ref(x, wk, wq, wv, wo, bo,
                                   num_heads=num_heads, head_size=head_size)
    assert out.shape == (B, T, C)
    # Tolerance covers the approx (EUP) reciprocal used at softmax finalize.
    assert jnp.allclose(out, ref, rtol=2e-3, atol=2e-3), "mismatch vs reference"

    print("KERNEL_OK")
</pallas_src>

<mosaic_0001>
module attributes {stable_mosaic.version = 11 : i64} {
  func.func @_qkv_proj_kernel(%arg0: i32, %arg1: i32, %arg2: memref<1x8x32xf32, #tpu.memory_space<vmem>>, %arg3: memref<32x32xf32, #tpu.memory_space<vmem>>, %arg4: memref<32x32xf32, #tpu.memory_space<vmem>>, %arg5: memref<32x32xf32, #tpu.memory_space<vmem>>, %arg6: memref<1x8x32xf32, #tpu.memory_space<vmem>>, %arg7: memref<1x8x32xf32, #tpu.memory_space<vmem>>, %arg8: memref<1x8x32xf32, #tpu.memory_space<vmem>>) attributes {dimension_semantics = [#tpu.dimension_semantics<parallel>, #tpu.dimension_semantics<parallel>], iteration_bounds = array<i64: 2, 1>, scalar_prefetch = 0 : i64, scratch_operands = 0 : i64, tpu.core_type = #tpu.core_type<tc>, window_params = [{transform_indices = @transform_0, window_bounds = array<i64: 1, 8, 32>}, {pipeline_mode = #tpu.pipeline_mode<synchronous>, transform_indices = @transform_1, window_bounds = array<i64: 32, 32>}, {pipeline_mode = #tpu.pipeline_mode<synchronous>, transform_indices = @transform_2, window_bounds = array<i64: 32, 32>}, {pipeline_mode = #tpu.pipeline_mode<synchronous>, transform_indices = @transform_3, window_bounds = array<i64: 32, 32>}, {transform_indices = @transform_4, window_bounds = array<i64: 1, 8, 32>}, {transform_indices = @transform_5, window_bounds = array<i64: 1, 8, 32>}, {transform_indices = @transform_6, window_bounds = array<i64: 1, 8, 32>}]} {
    %c0 = arith.constant 0 : index
    %c0_0 = arith.constant 0 : index
    %c0_1 = arith.constant 0 : index
    %0 = vector.load %arg2[%c0, %c0_0, %c0_1] : memref<1x8x32xf32, #tpu.memory_space<vmem>>, vector<1x8x32xf32>
    %1 = vector.shape_cast %0 : vector<1x8x32xf32> to vector<8x32xf32>
    %c0_2 = arith.constant 0 : index
    %c0_3 = arith.constant 0 : index
    %2 = vector.load %arg3[%c0_2, %c0_3] : memref<32x32xf32, #tpu.memory_space<vmem>>, vector<32x32xf32>
    %cst = arith.constant dense<0.000000e+00> : vector<8x32xf32>
    %3 = tpu.matmul %1, %2, %cst {dimension_numbers = #tpu.dot_dimension_numbers<[1], [0], [0], [1], [0, 0, 1, 1], [], []>} : vector<8x32xf32>, vector<32x32xf32>, vector<8x32xf32> -> vector<8x32xf32>
    %cst_4 = arith.constant 0.176776692 : f32
    %4 = vector.broadcast %cst_4 : f32 to vector<8x32xf32>
    %5 = arith.mulf %3, %4 : vector<8x32xf32>
    %c0_5 = arith.constant 0 : index
    %c0_6 = arith.constant 0 : index
    %c0_7 = arith.constant 0 : index
    %6 = vector.load %arg6[%c0_5, %c0_6, %c0_7] : memref<1x8x32xf32, #tpu.memory_space<vmem>>, vector<1x8x32xf32>
    %7 = vector.shape_cast %6 : vector<1x8x32xf32> to vector<8x32xf32>
    %8 = vector.shape_cast %5 : vector<8x32xf32> to vector<1x8x32xf32>
    tpu.vector_store %arg6[%c0_5, %c0_6, %c0_7], %8 {strides = array<i32>} : memref<1x8x32xf32, #tpu.memory_space<vmem>>, vector<1x8x32xf32>,
    %c0_8 = arith.constant 0 : index
    %c0_9 = arith.constant 0 : index
    %9 = vector.load %arg4[%c0_8, %c0_9] : memref<32x32xf32, #tpu.memory_space<vmem>>, vector<32x32xf32>
    %cst_10 = arith.constant dense<0.000000e+00> : vector<8x32xf32>
    %10 = tpu.matmul %1, %9, %cst_10 {dimension_numbers = #tpu.dot_dimension_numbers<[1], [0], [0], [1], [0, 0, 1, 1], [], []>} : vector<8x32xf32>, vector<32x32xf32>, vector<8x32xf32> -> vector<8x32xf32>
    %c0_11 = arith.constant 0 : index
    %c0_12 = arith.constant 0 : index
    %c0_13 = arith.constant 0 : index
    %11 = vector.load %arg7[%c0_11, %c0_12, %c0_13] : memref<1x8x32xf32, #tpu.memory_space<vmem>>, vector<1x8x32xf32>
    %12 = vector.shape_cast %11 : vector<1x8x32xf32> to vector<8x32xf32>
    %13 = vector.shape_cast %10 : vector<8x32xf32> to vector<1x8x32xf32>
    tpu.vector_store %arg7[%c0_11, %c0_12, %c0_13], %13 {strides = array<i32>} : memref<1x8x32xf32, #tpu.memory_space<vmem>>, vector<1x8x32xf32>,
    %c0_14 = arith.constant 0 : index
    %c0_15 = arith.constant 0 : index
    %14 = vector.load %arg5[%c0_14, %c0_15] : memref<32x32xf32, #tpu.memory_space<vmem>>, vector<32x32xf32>
    %cst_16 = arith.constant dense<0.000000e+00> : vector<8x32xf32>
    %15 = tpu.matmul %1, %14, %cst_16 {dimension_numbers = #tpu.dot_dimension_numbers<[1], [0], [0], [1], [0, 0, 1, 1], [], []>} : vector<8x32xf32>, vector<32x32xf32>, vector<8x32xf32> -> vector<8x32xf32>
    %c0_17 = arith.constant 0 : index
    %c0_18 = arith.constant 0 : index
    %c0_19 = arith.constant 0 : index
    %16 = vector.load %arg8[%c0_17, %c0_18, %c0_19] : memref<1x8x32xf32, #tpu.memory_space<vmem>>, vector<1x8x32xf32>
    %17 = vector.shape_cast %16 : vector<1x8x32xf32> to vector<8x32xf32>
    %18 = vector.shape_cast %15 : vector<8x32xf32> to vector<1x8x32xf32>
    tpu.vector_store %arg8[%c0_17, %c0_18, %c0_19], %18 {strides = array<i32>} : memref<1x8x32xf32, #tpu.memory_space<vmem>>, vector<1x8x32xf32>,
    return
  }
  func.func @transform_0(%arg0: i32, %arg1: i32) -> (i32, i32, i32) {
    %c0_i32 = arith.constant 0 : i32
    %c0_i32_0 = arith.constant 0 : i32
    return %arg0, %arg1, %c0_i32 : i32, i32, i32
  }
  func.func @transform_1(%arg0: i32, %arg1: i32) -> (i32, i32) {
    %c0_i32 = arith.constant 0 : i32
    %c0_i32_0 = arith.constant 0 : i32
    %c0_i32_1 = arith.constant 0 : i32
    return %c0_i32, %c0_i32_0 : i32, i32
  }
  func.func @transform_2(%arg0: i32, %arg1: i32) -> (i32, i32) {
    %c0_i32 = arith.constant 0 : i32
    %c0_i32_0 = arith.constant 0 : i32
    %c0_i32_1 = arith.constant 0 : i32
    return %c0_i32, %c0_i32_0 : i32, i32
  }
  func.func @transform_3(%arg0: i32, %arg1: i32) -> (i32, i32) {
    %c0_i32 = arith.constant 0 : i32
    %c0_i32_0 = arith.constant 0 : i32
    %c0_i32_1 = arith.constant 0 : i32
    return %c0_i32, %c0_i32_0 : i32, i32
  }
  func.func @transform_4(%arg0: i32, %arg1: i32) -> (i32, i32, i32) {
    %c0_i32 = arith.constant 0 : i32
    %c0_i32_0 = arith.constant 0 : i32
    return %arg0, %arg1, %c0_i32 : i32, i32, i32
  }
  func.func @transform_5(%arg0: i32, %arg1: i32) -> (i32, i32, i32) {
    %c0_i32 = arith.constant 0 : i32
    %c0_i32_0 = arith.constant 0 : i32
    return %arg0, %arg1, %c0_i32 : i32, i32, i32
  }
  func.func @transform_6(%arg0: i32, %arg1: i32) -> (i32, i32, i32) {
    %c0_i32 = arith.constant 0 : i32
    %c0_i32_0 = arith.constant 0 : i32
    return %arg0, %arg1, %c0_i32 : i32, i32, i32
  }
}

</mosaic_0001>

<bundles_post_ra>
// kernel: tpu_custom_call.1
= control target key start
LH: loop header
LB: loop body
LE: loop exit
PB: predicated region body
PF: predicated region fallthrough
CT: control target
= control target key end

     0   :  { %12 = vsyncpa [#allocation3], 0  ;;  %s1699_s0 = inlined_call_operand.hbm [shape: f32[2,8,32], index: 0, kind: input, shape index: {}]   ;;  %s1700_s1 = inlined_call_operand.hbm [shape: f32[32,32], index: 1, kind: input, shape index: {}]   ;;  %s1701_s2 = inlined_call_operand.hbm [shape: f32[32,32], index: 2, kind: input, shape index: {}]   ;;  %s1702_s3 = inlined_call_operand.hbm [shape: f32[32,32], index: 3, kind: input, shape index: {}]   ;;  %s1703_s4 = inlined_call_operand.hbm [shape: f32[2,8,32], index: 4, kind: output, shape index: {0}]   ;;  %s1704_s5 = inlined_call_operand.hbm [shape: f32[2,8,32], index: 5, kind: output, shape index: {1}]   ;;  %s1705_s6 = inlined_call_operand.hbm [shape: f32[2,8,32], index: 6, kind: output, shape index: {2}]  }
   0x1   :  { %14 = vsyncpa [#allocation3 + $0x1], 0 }
   0x2   :  { %15 = vsyncpa [#allocation6], 0 }
   0x3   :  { %16 = vsyncpa [#allocation9], 0 }
   0x4   :  { %17 = vsyncpa [#allocation4], 0 }
   0x5   :  { %19 = vsyncpa [#allocation4 + $0x1], 0 }
   0x6   :  { %20 = vsyncpa [#allocation12], 0 }
   0x7   :  { %22 = vsyncpa [#allocation12 + $0x1], 0  ;;  %s1321_s21 = smov 0   ;;  %s1323_s22 = smov 0  }
   0x8   :  { %s1325_s23 = smov 0   ;;  %s1327_s24 = smov 0  }
   0x9   :  { %s1329_s25 = smov 0   ;;  %s1331_s26 = smov 0  }
   0xa LB: > { %1714 = sst [smem:[#allocation19_spill]] %s1252_s21  ;;  %s1352_s27 = sadd.s32 4294967295, %s1272_s26   ;;  %s1272_s26 = sphi %s1331_s26, %s28_s26   ;;  %s1268_s25 = sphi %s1329_s25, %s1741_s25   ;;  %s1264_s24 = sphi %s1327_s24, %s1740_s24   ;;  %s1260_s23 = sphi %s1325_s23, %s1739_s23   ;;  %s1256_s22 = sphi %s1323_s22, %s1738_s22   ;;  %s1252_s21 = sphi %s1321_s21, %s1737_s21  }
   0xb   : > { %s1707_s28 = sadd.s32 4294967294, %s1272_s26   ;;  %p62_p0 = scmp.ne.s32.totalorder %s1256_s22, %s1252_s21 }
   0xc   : > { %p1706_p1 = scmp.eq.s32.totalorder %s1352_s27, 0  ;;  %p157_p3 = scmp.eq.s32.totalorder %s1707_s28, 1 }
   0xd   : > { %p808_p5 = scmp.ge.s32.totalorder %s1272_s26, 1  ;;  %p220_p7 = scmp.lt.s32.totalorder %s1272_s26, 3 }
   0xe   : > { %p1363_p4 = por %p1706_p1, %p62_p0  ;;  %p1368_p6 = por %p157_p3, %p62_p0 }
   0xf   : > { %p1373_p8 = pnand %p808_p5, %p220_p7  ;;  %s1274_s8 = smov [#allocation5]  }
  0x10   : > { %s1715_s29 = scalar_select %p1363_p4, 1, 0 }
  0x11   : > { %s1716_s30 = scalar_select %p1368_p6, 1, 0 }
  0x12   : > { %s1718_s7 = scalar_select %p1373_p8, 1, 0 }
  0x13   : > { %1717 = sst [smem:[#allocation20_spill]] %s1716_s30  ;;  %s232_s9 = sshll.u32 %s1274_s8, 4  ;;  %s1377_s9 = int_to_ptr.vmem [resolvable:$true] %s232_s9 }
  0x14   : > { %p920_p9 = pneg %p1373_p8  ;;  %s1275_s11 = smov [#allocation7]  }
  0x15   : > { %s245_s12 = sshll.u32 %s1275_s11, 4  ;;  %s1276_s13 = smov [#allocation8]   ;;  %s1388_s12 = int_to_ptr.vmem [resolvable:$true] %s245_s12 }
  0x16   : > { %p1384_p11 = pnand %p920_p9, %p1706_p1  ;;  %s1390_s14 = sshll.u32 %s1276_s13, 4  ;;  %s259_s14 = int_to_ptr.vmem [resolvable:$true] %s1390_s14 }
  0x17   : > { %s1008_s17 = scalar_lea.hbm %s1700_s1, 512 }
  0x18   : > { %p1009_p12 = scmp.ne.s32.totalorder %s1700_s1, %s1008_s17  ;;  %p1400_p13 = pneg %p1384_p11 }
  0x19   : > { %p1015_p5 = scmp.lt.u32.totalorder %s1008_s17, %s1700_s1 }
  0x1a   : > { %p1011_p0 = pnand %p1400_p13, %p1009_p12 }
  0x1c   : > { %p1012_p3 = pneg %p1011_p0 }
  0x1e   : > { %p1017_p7 = pnand %p1015_p5, %p1012_p3 }
  0x20   : > { %1020 = shalt.err (!%p1017_p7)
}
  0x21   : > { %s1021_s13 = scalar_lea.vmem %s1377_s9, 512  ;;  %p1029_p2 = scmp.lt.s32.totalorder %s1377_s9, %s1377_s9 }
  0x22   : > { %p1022_p9 = scmp.ne.s32.totalorder %s1377_s9, %s1021_s13  ;;  %p1030_p6 = scmp.lt.s32.totalorder %s1021_s13, %s1021_s13 }
  0x24   : > { %p1024_p10 = pnand %p1022_p9, %p1400_p13  ;;  %p1031_p12 = por %p1030_p6, %p1029_p2 }
  0x26   : > { %p1025_p1 = pneg %p1024_p10 }
  0x28   : > { %p1032_p0 = pnand %p1031_p12, %p1025_p1 }
  0x2a   : > { %1035 = shalt.err (!%p1032_p0)
}
  0x2b   : > { %s1277_s15 = smov 128   ;;  %s1278_s16 = smov 8  }
  0x2c   : > { %923 = dma.hbm_to_vmem [thread:$0]  (!%p1384_p11), %s1700_s1, 512, %s1377_s9, [#allocation6], %s1277_s15, %s1277_s15, %s1278_s16  }
  0x2d   : > { %s1036_s11 = scalar_lea.hbm %s1701_s2, 512 }
  0x2e   : > { %p1037_p1 = scmp.ne.s32.totalorder %s1701_s2, %s1036_s11  ;;  %p1043_p10 = scmp.lt.u32.totalorder %s1036_s11, %s1701_s2 }
  0x30   : > { %p1039_p2 = pnand %p1037_p1, %p1400_p13 }
  0x32   : > { %p1040_p6 = pneg %p1039_p2 }
  0x34   : > { %p1045_p3 = pnand %p1043_p10, %p1040_p6 }
  0x36   : > { %1048 = shalt.err (!%p1045_p3)
}
  0x37   : > { %s1049_s9 = scalar_lea.vmem %s1388_s12, 512  ;;  %p1057_p12 = scmp.lt.s32.totalorder %s1388_s12, %s1388_s12 }
  0x38   : > { %p1050_p5 = scmp.ne.s32.totalorder %s1388_s12, %s1049_s9  ;;  %p1058_p0 = scmp.lt.s32.totalorder %s1049_s9, %s1049_s9 }
  0x3a   : > { %p1052_p7 = pnand %p1050_p5, %p1400_p13  ;;  %p1059_p1 = por %p1058_p0, %p1057_p12 }
  0x3c   : > { %p1053_p9 = pneg %p1052_p7 }
  0x3e   : > { %p1060_p2 = pnand %p1059_p1, %p1053_p9 }
  0x40   : > { %1063 = shalt.err (!%p1060_p2)
}
  0x41   : > { %926 = dma.hbm_to_vmem [thread:$0]  (!%p1384_p11), %s1701_s2, 512, %s1388_s12, [#allocation6], %s1277_s15, %s1277_s15, %s1278_s16  }
  0x42   : > { %s1064_s18 = scalar_lea.hbm %s1702_s3, 512 }
  0x43   : > { %p1065_p6 = scmp.ne.s32.totalorder %s1702_s3, %s1064_s18  ;;  %p1071_p5 = scmp.lt.u32.totalorder %s1064_s18, %s1702_s3 }
  0x45   : > { %p1067_p10 = pnand %p1065_p6, %p1400_p13 }
  0x47   : > { %p1068_p3 = pneg %p1067_p10 }
  0x49   : > { %p1073_p7 = pnand %p1071_p5, %p1068_p3 }
  0x4b   : > { %1076 = shalt.err (!%p1073_p7)
}
  0x4c   : > { %s1077_s9 = scalar_lea.vmem %s259_s14, 512  ;;  %p1085_p1 = scmp.lt.s32.totalorder %s259_s14, %s259_s14 }
  0x4d   : > { %p1078_p9 = scmp.ne.s32.totalorder %s259_s14, %s1077_s9  ;;  %p1086_p2 = scmp.lt.s32.totalorder %s1077_s9, %s1077_s9 }
  0x4f   : > { %p1080_p12 = pnand %p1078_p9, %p1400_p13  ;;  %p1087_p4 = por %p1086_p2, %p1085_p1 }
  0x51   : > { %p1081_p0 = pneg %p1080_p12 }
  0x53   : > { %p1088_p8 = pnand %p1087_p4, %p1081_p0 }
  0x55   : > { %1091 = shalt.err (!%p1088_p8)
}
  0x56   : > { %929 = dma.hbm_to_vmem [thread:$0]  (!%p1384_p11), %s1702_s3, 512, %s259_s14, [#allocation9], %s1277_s15, %s1277_s15, %s1278_s16  }
  0x57   : > { %s49_s20 = sadd.s32 1, %s1260_s23  ;;  %s40_s10 = sadd.s32 1, %s1268_s25 }
  0x58   : > { %p56_p4 = scmp.ne.s32.totalorder %s1260_s23, %s1256_s22  ;;  %p42_p8 = scmp.ge.s32.totalorder %s40_s10, 2 }
  0x59   : > { %p57_p13 = scmp.eq.s32.totalorder %s1272_s26, 0  ;;  %p1721_p6 = scmp.eq.s32.totalorder %s1352_s27, 1 }
  0x5a   : > { %p947_p3 = scmp.lt.s32.totalorder %s1272_s26, 2  ;;  %s1743_s10 = smov (%p42_p8, %s40_s10), 0 }
  0x5b   : > { %p1479_p10 = por %p1721_p6, %p56_p4  ;;  %p58_p5 = por %p57_p13, %p56_p4 }
  0x5c   : > { %s272_s30 = sand.u32 1, %s1260_s23   ;;  %s44_s17 = ssub.s32 %s1268_s25, %s1743_s10 }
  0x5d   : > { %p47_p7 = scmp.eq.s32.totalorder %s44_s17, 0  ;;  %s813_s14 = sshll.u32 %s272_s30, 3 }
  0x5e   : > { %s814_s15 = sshll.u32 %s1268_s25, 7  ;;  %s276_s11 = scalar_lea.vmem [#allocation2], %s813_s14 }
  0x5f   : > { %s1491_s16 = scalar_select %p47_p7, %s1260_s23, %s49_s20  }
  0x60   : > { %s1496_s8 = scalar_lea.hbm %s1699_s0, %s814_s15  ;;  %s284_s13 = sshll.u32 %s276_s11, 4  ;;  %s1498_s13 = int_to_ptr.vmem [resolvable:$true] %s284_s13 }
  0x61   : > { %p1502_p11 = pnand %p947_p3, %p58_p5  ;;  %s273_s12 = scalar_lea.sflag [#allocation3], %s272_s30 }
  0x62   : > { %s1092_s21 = scalar_lea.hbm %s1496_s8, 128  ;;  %s1097_s14 = scalar_lea.hbm %s1699_s0, 256 }
  0x63   : > { %p1093_p9 = scmp.ne.s32.totalorder %s1496_s8, %s1092_s21  ;;  %p1094_p12 = pneg %p1502_p11 }
  0x64   : > { %p1098_p2 = scmp.lt.u32.totalorder %s1496_s8, %s1699_s0  ;;  %p1099_p4 = scmp.lt.u32.totalorder %s1097_s14, %s1092_s21 }
  0x65   : > { %p1095_p0 = pnand %p1094_p12, %p1093_p9  ;;  %p1101_p13 = scmp.lt.u32.totalorder %s1092_s21, %s1496_s8 }
  0x66   : > { %p1100_p8 = por %p1099_p4, %p1098_p2 }
  0x67   : > { %p1096_p1 = pneg %p1095_p0 }
  0x68   : > { %p1102_p6 = por %p1101_p13, %p1100_p8 }
  0x6a   : > { %p1103_p3 = pnand %p1102_p6, %p1096_p1 }
  0x6c   : > { %1106 = shalt.err (!%p1103_p3)
}
  0x6d   : > { %s1107_s30 = scalar_lea.vmem %s1498_s13, 128  ;;  %s1279_s19 = smov [#allocation2]  }
  0x6e   : > { %p1108_p5 = scmp.ne.s32.totalorder %s1498_s13, %s1107_s30  ;;  %s1112_s11 = sshll.u32 %s1279_s19, 4  ;;  %s1113_s11 = int_to_ptr.vmem [resolvable:$false] %s1112_s11 }
  0x6f   : > { %s1114_s20 = scalar_lea.vmem %s1113_s11, 256  ;;  %p1115_p0 = scmp.lt.s32.totalorder %s1498_s13, %s1113_s11 }
  0x70   : > { %p1110_p7 = pnand %p1108_p5, %p1094_p12  ;;  %p1116_p2 = scmp.lt.s32.totalorder %s1114_s20, %s1107_s30 }
  0x72   : > { %p1111_p9 = pneg %p1110_p7  ;;  %p1117_p4 = por %p1116_p2, %p1115_p0 }
  0x74   : > { %p1118_p8 = pnand %p1117_p4, %p1111_p9 }
  0x76   : > { %1121 = shalt.err (!%p1118_p8)
}
  0x77   : > { %933 = dma.hbm_to_vmem [thread:$0]  (!%p1502_p11), %s1496_s8, 128, %s1498_s13, %s273_s12  }
  0x78   : > { %p1724_p1 = scmp.ne.s32.totalorder %s1718_s7, 0 }
  0x79   : > { %s1534_s21 = sand.u32 (!%p1724_p1), 1, %s1256_s22   ;;  %p1725_p12 = scmp.ne.s32.totalorder (!%p1724_p1), %s1715_s29, 0 }
  0x7a   : > { %293 = sbr.rel (%p1724_p1) target bundleno = 420 (0x1a4), region = 36  ;;  %s1537_s17 = sshll.u32 (!%p1724_p1), %s1534_s21, 3 }
  0x7b   : > { %s296_s14 = scalar_lea.sflag (!%p1724_p1), [#allocation3], %s1534_s21  ;;  %s299_s15 = scalar_lea.vmem (!%p1724_p1), [#allocation2], %s1537_s17 }
  0x81   : > { %1231 = dma.done.wait (%p1725_p12), %s296_s14, 128  }
  0x82   : > { %1233 = vsyncadd (%p1725_p12), %s296_s14, 4294967168  ;;  %p1726_p11 = scmp.eq.s32.totalorder %s1352_s27, 0 }
  0x84   : > { %1235 = dma.done.wait (%p1726_p11), [#allocation6], 1024   ;;  %p1727_p13 = pmov %p1726_p11 }
  0x85   : > { %p1728_p6 = pmov %p1726_p11 }
  0x86   : > { %1237 = vsyncadd (%p1727_p13), [#allocation6], 4294966272 }
  0x87   : > { %1239 = dma.done.wait (%p1728_p6), [#allocation9], 512   ;;  %p1729_p3 = pmov %p1728_p6 }
  0x88   : > { %v1280_v0 = vmov 0.0|0.0   ;;  %vm1281_vm0 = vmmov 0   ;;  %v1282_v1 = vmov 0.0   ;;  %v351_v2 = vld [vmem:[#allocation5] sm:$0xff]  ;;  %v352_v3 = vld [vmem:[#allocation5 + $0x8] sm:$0xff]  ;;  %v353_v4 = vld [vmem:[#allocation5 + $0x10] sm:$0xff] }
  0x89   : > { %1241 = vsyncadd (%p1729_p3), [#allocation9], 4294966784  ;;  %882 = vmatprep.subr.bf16.mxu0 %v1280_v0  ;;  %888 = vmatprep.subr.bf16.mxu1 %v1280_v0  ;;  %v883_v5 = vpack.c.bf16 %v352_v3, %v351_v2  ;;  %v354_v6 = vld [vmem:[#allocation5 + $0x18] sm:$0xff]  ;;  %v431_v7 = vld [vmem:[#allocation7] sm:$0xff]  ;;  %vm355_vm1 = vcmask 261120   ;;  %s586_s29 = sand.u32 1, %s1352_s27  }
  0x8a   : > { %857 = vmatprep.mubr.msk.f32.mxu0 %vm1281_vm0, %v1282_v1  ;;  %868 = vmatprep.mubr.msk.f32.mxu1 %vm1281_vm0, %v1282_v1  ;;  %v432_v8 = vld [vmem:[#allocation7 + $0x8] sm:$0xff]  ;;  %v886_v10 = vpack.c.bf16 %v354_v6, %v353_v4  ;;  %v433_v11 = vld [vmem:[#allocation7 + $0x10] sm:$0xff]  ;;  %v434_v12 = vld [vmem:[#allocation7 + $0x18] sm:$0xff]  ;;  %s1563_s7 = sshll.u32 %s1264_s24, 7  ;;  %s342_s8 = scalar_lea.vmem [#allocation11], %s1537_s17 }
  0x8b   : > { %v889_v9 = vpack.c.bf16 %v432_v8, %v431_v7  ;;  %884 = vmatpush3.bf16.msra.mxu0 %v883_v5  ;;  %v506_v13 = vld [vmem:[#allocation8] sm:$0xff]  ;;  %v507_v14 = vld [vmem:[#allocation8 + $0x8] sm:$0xff]  ;;  %v892_v15 = vpack.c.bf16 %v434_v12, %v433_v11  ;;  %v350_v16 = vld [vmem:[%s299_s15] sm:$0xff]  ;;  %s620_s13 = sshll.u32 %s342_s8, 4  ;;  %s1713_s9 = scalar_lea.vmem [#allocation10], %s1537_s17  ;;  %s1575_s13 = int_to_ptr.vmem [resolvable:$true] %s620_s13 }
  0x8c   : > { %885 = vmatprep.subr.bf16.mxu0 %v1280_v0  ;;  %v895_v17 = vpack.c.bf16 %v507_v14, %v506_v13  ;;  %v508_v18 = vld [vmem:[#allocation8 + $0x10] sm:$0xff]  ;;  %v509_v19 = vld [vmem:[#allocation8 + $0x18] sm:$0xff]  ;;  %s606_s12 = sshll.u32 %s1713_s9, 4  ;;  %s1573_s19 = scalar_lea.hbm %s1704_s5, %s1563_s7  ;;  %s1583_s12 = int_to_ptr.vmem [resolvable:$true] %s606_s12 }
  0x8d   : > { %890 = vmatpush3.bf16.msra.mxu1 %v889_v9  ;;  %v898_v20 = vpack.c.bf16 %v509_v19, %v508_v18  ;;  %s1581_s11 = scalar_lea.hbm %s1703_s4, %s1563_s7  ;;  %s1712_s20 = scalar_lea.vmem [#allocation13], %s1537_s17 }
  0x8e   : > { %891 = vmatprep.subr.bf16.mxu1 %v1280_v0  ;;  %s1589_s14 = sshll.u32 %s1712_s20, 4  ;;  %s1591_s15 = scalar_lea.sflag [#allocation12], %s586_s29  ;;  %s1647_s14 = int_to_ptr.vmem [resolvable:$true] %s1589_s14 }
  0x8f   : > { %887 = vmatpush3.bf16.msra.mxu0 %v886_v10  ;;  %s1122_s18 = scalar_lea.vmem %s1575_s13, 128  ;;  %s1283_s30 = smov [#allocation11]  }
  0x90   : > { %894 = vmatprep.subr.bf16.mxu0 %v1280_v0  ;;  %p1123_p5 = scmp.ne.s32.totalorder %s1575_s13, %s1122_s18  ;;  %s1126_s24 = sshll.u32 %s1283_s30, 4  ;;  %s1127_s24 = int_to_ptr.vmem [resolvable:$false] %s1126_s24 }
  0x91   : > { %893 = vmatpush3.bf16.msra.mxu1 %v892_v15  ;;  %s1128_s27 = scalar_lea.vmem %s1127_s24, 256  ;;  %p1129_p0 = scmp.lt.s32.totalorder %s1575_s13, %s1127_s24 }
  0x92   : > { %858 = vmatmul.mubr.msk.f32.vlgmr.msra.gmra.mrb[0].mxu0 %vm355_vm1, %v350_v16  ;;  %p1124_p7 = pnand %p1123_p5, %p1479_p10  ;;  %p1130_p2 = scmp.lt.s32.totalorder %s1128_s27, %s1122_s18 }
  0x93   : > { %896 = vmatpush3.bf16.msra.mxu0 %v895_v17  ;;  %879 = vmatprep.mubr.msk.f32.mxu0 %vm1281_vm0, %v1282_v1 }
  0x94   : > { %869 = vmatmul.mubr.msk.f32.vlgmr.msra.gmra.mrb[0].mxu1 %vm355_vm1, %v350_v16  ;;  %897 = vmatprep.subr.bf16.mxu0 %v1280_v0  ;;  %p1125_p9 = pneg %p1124_p7  ;;  %p1131_p4 = por %p1130_p2, %p1129_p0 }
  0x96   : > { %p1132_p8 = pnand %p1131_p4, %p1125_p9 }
  0x97   : > { %899 = vmatpush3.bf16.msra.mxu0 %v898_v20 }
  0x9a   : > { %880 = vmatmul.mubr.msk.f32.vlgmr.msra.gmra.mrb[2].mxu0 %vm355_vm1, %v350_v16 }
 0x165   : > { %v425_v21 = vpop.f32.mrb[0].mxu0 }
 0x166   : > { %v429_v22 = vmul.f32 0.17677669, %v425_v21  ;;  %v859_v23 = vpop.f32.mrb[1].mxu0 }
 0x167   : > { %v501_v24 = vpop.f32.mrb[0].mxu1 }
 0x168   : > { %505 = vst.msk [vmem:[%s342_s8] sm:$0xff] %vm355_vm1, %v501_v24  ;;  %v870_v25 = vpop.f32.mrb[1].mxu1 }
 0x169   : > { %1135 = shalt.err (!%p1132_p8)
}
 0x16a   : > { %s1136_s29 = scalar_lea.hbm %s1573_s19, 128  ;;  %s1140_s30 = scalar_lea.hbm %s1704_s5, 256 }
 0x16b   : > { %p1137_p1 = scmp.ne.s32.totalorder %s1573_s19, %s1136_s29  ;;  %p1141_p13 = scmp.lt.u32.totalorder %s1573_s19, %s1704_s5 }
 0x16c   : > { %p1142_p6 = scmp.lt.u32.totalorder %s1140_s30, %s1136_s29  ;;  %p1144_p5 = scmp.lt.u32.totalorder %s1136_s29, %s1573_s19 }
 0x16d   : > { %p1138_p12 = pnand %p1137_p1, %p1479_p10 }
 0x16e   : > { %p1143_p3 = por %p1142_p6, %p1141_p13 }
 0x16f   : > { %p1139_p11 = pneg %p1138_p12 }
 0x170   : > { %p1145_p7 = por %p1144_p5, %p1143_p3 }
 0x172   : > { %p1146_p9 = pnand %p1145_p7, %p1139_p11 }
 0x174   : > { %1149 = shalt.err (!%p1146_p9)
}
 0x175   : > { %915 = dma.vmem_to_hbm [thread:$0]  (%p1479_p10), %s1575_s13, 128, %s1573_s19, %s1591_s15  }
 0x176   : > { %s1730_s9 = scalar_lea.vmem [#allocation10], %s1537_s17  ;;  %s582_s20 = scalar_lea.sflag [#allocation4], %s1534_s21 }
 0x177   : > { %430 = vst.msk [vmem:[%s1730_s9] sm:$0xff] %vm355_vm1, %v429_v22  ;;  %s1150_s18 = scalar_lea.vmem %s1583_s12, 128  ;;  %s1284_s27 = smov [#allocation10]  }
 0x178   : > { %p1151_p0 = scmp.ne.s32.totalorder %s1583_s12, %s1150_s18  ;;  %s1154_s29 = sshll.u32 %s1284_s27, 4  ;;  %s1155_s29 = int_to_ptr.vmem [resolvable:$false] %s1154_s29 }
 0x179   : > { %s1156_s8 = scalar_lea.vmem %s1155_s29, 256  ;;  %p1157_p8 = scmp.lt.s32.totalorder %s1583_s12, %s1155_s29 }
 0x17a   : > { %p1152_p2 = pnand %p1151_p0, %p1479_p10  ;;  %p1158_p1 = scmp.lt.s32.totalorder %s1156_s8, %s1150_s18 }
 0x17c   : > { %p1153_p4 = pneg %p1152_p2  ;;  %p1159_p12 = por %p1158_p1, %p1157_p8 }
 0x17e   : > { %p1160_p11 = pnand %p1159_p12, %p1153_p4 }
 0x180   : > { %1163 = shalt.err (!%p1160_p11)
}
 0x181   : > { %s1164_s21 = scalar_lea.hbm %s1581_s11, 128  ;;  %s1168_s30 = scalar_lea.hbm %s1703_s4, 256 }
 0x182   : > { %p1165_p13 = scmp.ne.s32.totalorder %s1581_s11, %s1164_s21  ;;  %p1169_p5 = scmp.lt.u32.totalorder %s1581_s11, %s1703_s4 }
 0x183   : > { %p1170_p7 = scmp.lt.u32.totalorder %s1168_s30, %s1164_s21  ;;  %p1172_p0 = scmp.lt.u32.totalorder %s1164_s21, %s1581_s11 }
 0x184   : > { %p1166_p6 = pnand %p1165_p13, %p1479_p10 }
 0x185   : > { %p1171_p9 = por %p1170_p7, %p1169_p5 }
 0x186   : > { %p1167_p3 = pneg %p1166_p6 }
 0x187   : > { %p1173_p2 = por %p1172_p0, %p1171_p9 }
 0x189   : > { %p1174_p4 = pnand %p1173_p2, %p1167_p3 }
 0x18b   : > { %1177 = shalt.err (!%p1174_p4)
}
 0x18c   : > { %914 = dma.vmem_to_hbm [thread:$0]  (%p1479_p10), %s1583_s12, 128, %s1581_s11, %s582_s20   ;;  %v576_v26 = vpop.f32.mrb[2].mxu0 }
 0x18d   : > { %s1644_s29 = scalar_lea.hbm %s1705_s6, %s1563_s7  ;;  %s1731_s8 = scalar_lea.vmem [#allocation13], %s1537_s17  ;;  %v881_v27 = vpop.f32.mrb[3].mxu0 }
 0x18e   : > { %580 = vst.msk [vmem:[%s1731_s8] sm:$0xff] %vm355_vm1, %v576_v26  ;;  %s1178_s21 = scalar_lea.vmem %s1647_s14, 128  ;;  %s1285_s12 = smov [#allocation13]  }
 0x18f   : > { %p1179_p8 = scmp.ne.s32.totalorder %s1647_s14, %s1178_s21  ;;  %s1182_s11 = sshll.u32 %s1285_s12, 4  ;;  %s1183_s11 = int_to_ptr.vmem [resolvable:$false] %s1182_s11 }
 0x190   : > { %s1184_s7 = scalar_lea.vmem %s1183_s11, 256  ;;  %p1185_p11 = scmp.lt.s32.totalorder %s1647_s14, %s1183_s11 }
 0x191   : > { %p1180_p1 = pnand %p1179_p8, %p1479_p10  ;;  %p1186_p13 = scmp.lt.s32.totalorder %s1184_s7, %s1178_s21 }
 0x193   : > { %p1181_p12 = pneg %p1180_p1  ;;  %p1187_p6 = por %p1186_p13, %p1185_p11 }
 0x195   : > { %p1188_p3 = pnand %p1187_p6, %p1181_p12 }
 0x197   : > { %1191 = shalt.err (!%p1188_p3)
}
 0x198   : > { %s1192_s17 = scalar_lea.hbm %s1644_s29, 128  ;;  %s1196_s19 = scalar_lea.hbm %s1705_s6, 256 }
 0x199   : > { %p1193_p5 = scmp.ne.s32.totalorder %s1644_s29, %s1192_s17  ;;  %p1197_p0 = scmp.lt.u32.totalorder %s1644_s29, %s1705_s6 }
 0x19a   : > { %p1198_p2 = scmp.lt.u32.totalorder %s1196_s19, %s1192_s17  ;;  %p1200_p8 = scmp.lt.u32.totalorder %s1192_s17, %s1644_s29 }
 0x19b   : > { %p1194_p7 = pnand %p1193_p5, %p1479_p10 }
 0x19c   : > { %p1199_p4 = por %p1198_p2, %p1197_p0 }
 0x19d   : > { %p1195_p9 = pneg %p1194_p7 }
 0x19e   : > { %p1201_p1 = por %p1200_p8, %p1199_p4 }
 0x1a0   : > { %p1202_p12 = pnand %p1201_p1, %p1195_p9 }
 0x1a2   : > { %1205 = shalt.err (!%p1202_p12)
}
 0x1a3   : > { %916 = dma.vmem_to_hbm [thread:$0]  (%p1479_p10), %s1647_s14, 128, %s1644_s29, %s1591_s15  }
 0x1a4 PF: > { %s1732_s9 = sld [smem:[#allocation19_spill]]  ;;  %s1733_s18 = sld [smem:[#allocation20_spill]] }
 0x1a5   : > { %p1735_p13 = scmp.ge.s32.totalorder %s1272_s26, 2 }
 0x1aa   : > { %s646_s27 = sand.u32 1, %s1732_s9   ;;  %p1734_p11 = scmp.ne.s32.totalorder %s1733_s18, 0 }
 0x1ab   : > { %s647_s8 = scalar_lea.sflag [#allocation4], %s646_s27 }
 0x1ac   : > { %p935_p6 = pnand %p1735_p13, %p1734_p11 }
 0x1ae   : > { %1243 = dma.done.wait (!%p935_p6), %s647_s8, 128  }
 0x1af   : > { %1245 = vsyncadd (!%p935_p6), %s647_s8, 4294967168  ;;  %s1736_s21 = sadd.s32 4294967294, %s1272_s26  }
 0x1b0   : > { %s655_s12 = sand.u32 1, %s1736_s21  }
 0x1b1   : > { %s656_s11 = scalar_lea.sflag [#allocation12], %s655_s12 }
 0x1b2   : > { %1247 = dma.done.wait (!%p935_p6), %s656_s11, 256  }
 0x1b3   : > { %1249 = vsyncadd (!%p935_p6), %s656_s11, 4294967040  ;;  %s28_s26 = sadd.s32 1, %s1272_s26   ;;  %s1737_s21 = smov %s1256_s22 }
 0x1b4   : > { %p25_p10 = scmp.ge.s32.totalorder %s28_s26, 4   ;;  %s1738_s22 = smov %s1260_s23 }
 0x1b5   : > { %s1739_s23 = smov %s1491_s16  ;;  %s1740_s24 = smov %s1268_s25 }
 0x1b6   : > { %s1741_s25 = smov %s1743_s10  ;;  %27 = sbr.rel (!%p25_p10) target bundleno = 10 (0xa), region = 125 }
 0x1bd   :  { %670 = vsyncpa [#allocation3], 1 }
 0x1be   :  { %672 = vsyncpa [#allocation3 + $0x1], 1 }
 0x1bf   :  { %673 = vsyncpa [#allocation6], 1 }
 0x1c0   :  { %674 = vsyncpa [#allocation9], 1 }
 0x1c1   :  { %675 = vsyncpa [#allocation4], 1 }
 0x1c2   :  { %677 = vsyncpa [#allocation4 + $0x1], 1 }
 0x1c3   :  { %678 = vsyncpa [#allocation12], 1 }
 0x1c4   :  { %680 = vsyncpa [#allocation12 + $0x1], 1 }

</bundles_post_ra>
